<compile_context>
chip_gen: v6e
topology: v6e:2x2x1
jax: 0.10.0
libtpu: 0.0.40
codegen_flags: <defaults>
</compile_context>

<pallas_src>
import jax
import jax.numpy as jnp
from jax.experimental import pallas as pl
from jax.experimental.pallas import tpu as pltpu


def _cdiv(a: int, b: int) -> int:
    return -(-a // b)


def _round_up(a: int, m: int) -> int:
    return _cdiv(a, m) * m


def _min_sublane_for(dtype) -> int:
    # TPU min second-minor tile: 8 rows for 4-byte, 16 for 2-byte, 32 for 1-byte dtypes.
    itemsize = jnp.dtype(dtype).itemsize
    return {4: 8, 2: 16, 1: 32}.get(itemsize, 8)


def _tpu_hw_params():
    """Best-effort (vmem_capacity_bytes, multi_tensorcore) query with safe fallbacks."""
    vmem_cap = 64 * 1024 * 1024          # conservative default (v7x per-TC VMEM)
    multi_tc = False
    try:
        info = pltpu.get_tpu_info()
        cap = int(getattr(info, "vmem_capacity_bytes", 0) or 0)
        if cap > 0:
            vmem_cap = cap
        cores = getattr(info, "num_cores", None) or getattr(info, "tensorcores_per_chip", None)
        if cores is not None:
            multi_tc = int(cores) > 1
        else:
            # Heuristic: v7x has 64 MiB VMEM/TC and 2 TCs; v5e/v6e have 128 MiB and 1 TC.
            multi_tc = vmem_cap <= 96 * 1024 * 1024
    except Exception:
        pass
    return vmem_cap, multi_tc


def _reuse_fork_copy_kernel(x_ref, *out_refs):
    # Pure fan-out: re-read the input view for every output store instead of
    # holding a multi-MiB tile live as a value (avoids an extra full-tile VMEM
    # temp / spills; HBM bandwidth is the only binding resource here).
    for o_ref in out_refs:
        o_ref[...] = x_ref[...]


def _fanout_copy(x, num_copies, vmem_tile_budget_bytes=None):
    """One Pallas call producing `num_copies` materialized copies of x."""
    orig_shape = x.shape
    dtype = x.dtype
    itemsize = jnp.dtype(dtype).itemsize
    total = int(x.size)
    if total == 0 or num_copies == 0:
        return tuple(x for _ in range(num_copies))

    vmem_cap, multi_tc = _tpu_hw_params()
    if vmem_tile_budget_bytes is None:
        budget = int(vmem_cap * 0.70)            # ~45 MiB on v7x, ~90 MiB on v5e/v6e
    else:
        budget = min(int(vmem_tile_budget_bytes), int(vmem_cap * 0.85))
    budget = max(budget, 4 * 1024 * 1024)

    min_sub = _min_sublane_for(dtype)

    # ---- Choose a lane-dense 2D view of x (no padding, no extra wrapper copies). ----
    lanes = None
    for cand in (1024, 512, 256, 128):
        if total % cand == 0:
            lanes = cand
            break
    if lanes is not None:                        # common case: lane-dense reshape
        x2d = x.reshape(total // lanes, lanes)
        tile_axis, tile_unit = 0, min_sub
    elif x.ndim >= 2:                            # ragged: keep full last dim, tile rows
        x2d = x.reshape(-1, orig_shape[-1])
        tile_axis, tile_unit = 0, min_sub
    else:                                        # ragged 1-D / 0-D: tile along lanes
        x2d = x.reshape(1, total)
        tile_axis, tile_unit = 1, 128

    R, C = x2d.shape
    extent = x2d.shape[tile_axis]

    def _phys_tile_bytes(r, c):
        # Physical VMEM footprint of an (r, c) block incl. (sublane, lane) padding.
        return _round_up(max(int(r), 1), min_sub) * _round_up(max(int(c), 1), 128) * itemsize

    # ---- Tile sizing: biggest tiles that keep all double-buffered tiles in budget,
    # while keeping enough grid steps for read/write overlap (and v7x megacore). ----
    n_live = 2 * (1 + num_copies)                # Pallas double-buffers every operand
    if tile_axis == 0:
        unit_bytes = _phys_tile_bytes(tile_unit, C)
    else:
        unit_bytes = _phys_tile_bytes(R, tile_unit)
    max_units = max(1, (budget // n_live) // unit_bytes)
    total_units = _cdiv(extent, tile_unit)
    total_bytes = total * itemsize

    if total_bytes >= (4 << 20):
        target_steps = 8 if multi_tc else 4      # pipeline depth / megacore sharding
    elif multi_tc and total_units >= 2:
        target_steps = 2
    else:
        target_steps = 1                         # tiny input: no per-step overhead

    # Keep each step worth >= ~1 MiB (amortizes ~0.35 us/step) unless x is smaller.
    min_units = min(total_units, max(1, _cdiv(1 << 20, unit_bytes)), max_units)

    tile_units = min(total_units, max_units)
    if target_steps > 1:
        want = _cdiv(total_units, target_steps)
        tile_units = min(tile_units, max(want, min_units))
    tile_units = max(1, min(tile_units, max_units))

    steps = _cdiv(total_units, tile_units)
    if multi_tc and steps > 1 and steps % 2 == 1:
        alt = _cdiv(total_units, steps + 1)      # nudge to an even step count (2 TCs)
        if alt >= 1 and _cdiv(total_units, alt) % 2 == 0:
            tile_units = alt
            steps = _cdiv(total_units, alt)

    if steps == 1:
        block = (R, C)                           # full-array block: no (8,128) constraint
        index_map = lambda i: (0, 0)
    elif tile_axis == 0:
        block = (tile_units * tile_unit, C)      # last dim = full C or multiple of 128
        index_map = lambda i: (i, 0)
    else:
        block = (R, tile_units * tile_unit)      # lane-tiled; Pallas masks the ragged tail
        index_map = lambda i: (0, i)

    tile_bytes = _phys_tile_bytes(*block)
    spec = pl.BlockSpec(block, index_map)
    vmem_limit = min(int(vmem_cap), max(32 << 20, n_live * tile_bytes + (4 << 20)))

    cost = pl.CostEstimate(
        flops=0,
        transcendentals=0,
        bytes_accessed=(1 + num_copies) * total * itemsize,
    )

    # TODO(synk): for very large num_copies on v7x, fan out with manual VMEM->HBM
    # pltpu.make_async_copy DMAs (outputs in pl.ANY) so VMEM only holds the
    # double-buffered input and tiles stay ~N x larger.
    outs = pl.pallas_call(
        _reuse_fork_copy_kernel,
        out_shape=tuple(jax.ShapeDtypeStruct((R, C), dtype) for _ in range(num_copies)),
        grid_spec=pltpu.PrefetchScalarGridSpec(
            num_scalar_prefetch=0,
            grid=(steps,),
            in_specs=[spec],
            out_specs=tuple(spec for _ in range(num_copies)),
        ),
        compiler_params=pltpu.CompilerParams(
            dimension_semantics=("parallel",),
            vmem_limit_bytes=vmem_limit,
        ),
        cost_estimate=cost,
    )(x2d)

    if not isinstance(outs, (list, tuple)):
        outs = (outs,)
    return tuple(o.reshape(orig_shape) for o in outs)


def reuse_fork(x, names, *, materialize=True, vmem_tile_budget_bytes=None):
    """Pallas implementation of ReuseFork.forward.

    Returns {name: array equal to x}.  names[0] always aliases x (zero-copy,
    matching PyTorch's reuse-by-reference semantics).  With materialize=True,
    names[1:] get distinct HBM buffers from one bandwidth-bound Pallas fan-out
    kernel; with materialize=False every name aliases x (fastest, and still an
    exact match of the PyTorch semantics for immutable JAX arrays).
    """
    names = list(names)
    if not names:
        return {}
    result = {names[0]: x}
    rest = names[1:]
    if not rest:
        return result
    if not materialize:
        for name in rest:
            result[name] = x
        return result
    copies = _fanout_copy(x, len(rest), vmem_tile_budget_bytes)
    for name, c in zip(rest, copies):
        result[name] = c
    return result


if __name__ == "__main__":
    names = ["left", "right", "skip"]            # ReuseFork(["left", "right", "skip"])
    key = jax.random.PRNGKey(0)
    x = jax.random.normal(key, (2, 4, 16, 16), dtype=jnp.float32)   # NCHW activation

    out = reuse_fork(x, names)
    out = jax.block_until_ready(out)

    # Verify exact ReuseFork semantics: each named output equals x.
    assert set(out.keys()) == set(names)
    for name in names:
        assert out[name].shape == x.shape
        assert out[name].dtype == x.dtype
        assert bool(jnp.all(out[name] == x))

    # Ragged-size path (total % 128 != 0): handled via Pallas block masking,
    # no pad / slice round trips.
    x_ragged = jax.random.normal(key, (3, 5, 7), dtype=jnp.float32)
    out_r = jax.block_until_ready(reuse_fork(x_ragged, ["a", "b"]))
    for name in ("a", "b"):
        assert out_r[name].shape == x_ragged.shape
        assert bool(jnp.all(out_r[name] == x_ragged))

    print("KERNEL_OK")
</pallas_src>

<mosaic_0001>
module attributes {stable_mosaic.version = 11 : i64} {
  func.func @_reuse_fork_copy_kernel(%arg0: i32, %arg1: memref<2x1024xf32, #tpu.memory_space<vmem>>, %arg2: memref<2x1024xf32, #tpu.memory_space<vmem>>, %arg3: memref<2x1024xf32, #tpu.memory_space<vmem>>) attributes {dimension_semantics = [#tpu.dimension_semantics<parallel>], iteration_bounds = array<i64: 1>, scalar_prefetch = 0 : i64, scratch_operands = 0 : i64, tpu.core_type = #tpu.core_type<tc>, window_params = [{pipeline_mode = #tpu.pipeline_mode<synchronous>, transform_indices = @transform_0, window_bounds = array<i64: 2, 1024>}, {pipeline_mode = #tpu.pipeline_mode<synchronous>, transform_indices = @transform_1, window_bounds = array<i64: 2, 1024>}, {pipeline_mode = #tpu.pipeline_mode<synchronous>, transform_indices = @transform_2, window_bounds = array<i64: 2, 1024>}]} {
    %c0 = arith.constant 0 : index
    %c0_0 = arith.constant 0 : index
    %0 = vector.load %arg1[%c0, %c0_0] : memref<2x1024xf32, #tpu.memory_space<vmem>>, vector<2x1024xf32>
    %c0_1 = arith.constant 0 : index
    %c0_2 = arith.constant 0 : index
    %1 = vector.load %arg2[%c0_1, %c0_2] : memref<2x1024xf32, #tpu.memory_space<vmem>>, vector<2x1024xf32>
    tpu.vector_store %arg2[%c0_1, %c0_2], %0 {strides = array<i32>} : memref<2x1024xf32, #tpu.memory_space<vmem>>, vector<2x1024xf32>,
    %c0_3 = arith.constant 0 : index
    %c0_4 = arith.constant 0 : index
    %2 = vector.load %arg1[%c0_3, %c0_4] : memref<2x1024xf32, #tpu.memory_space<vmem>>, vector<2x1024xf32>
    %c0_5 = arith.constant 0 : index
    %c0_6 = arith.constant 0 : index
    %3 = vector.load %arg3[%c0_5, %c0_6] : memref<2x1024xf32, #tpu.memory_space<vmem>>, vector<2x1024xf32>
    tpu.vector_store %arg3[%c0_5, %c0_6], %2 {strides = array<i32>} : memref<2x1024xf32, #tpu.memory_space<vmem>>, vector<2x1024xf32>,
    return
  }
  func.func @transform_0(%arg0: i32) -> (i32, i32) {
    %c0_i32 = arith.constant 0 : i32
    %c0_i32_0 = arith.constant 0 : i32
    %c0_i32_1 = arith.constant 0 : i32
    return %c0_i32, %c0_i32_0 : i32, i32
  }
  func.func @transform_1(%arg0: i32) -> (i32, i32) {
    %c0_i32 = arith.constant 0 : i32
    %c0_i32_0 = arith.constant 0 : i32
    %c0_i32_1 = arith.constant 0 : i32
    return %c0_i32, %c0_i32_0 : i32, i32
  }
  func.func @transform_2(%arg0: i32) -> (i32, i32) {
    %c0_i32 = arith.constant 0 : i32
    %c0_i32_0 = arith.constant 0 : i32
    %c0_i32_1 = arith.constant 0 : i32
    return %c0_i32, %c0_i32_0 : i32, i32
  }
}

</mosaic_0001>

<bundles_post_ra>
// kernel: tpu_custom_call.1
= control target key start
LH: loop header
LB: loop body
LE: loop exit
PB: predicated region body
PF: predicated region fallthrough
CT: control target
= control target key end

     0   :  { %8 = vsyncpa [#allocation3], 0  ;;  %s157_s0 = inlined_call_operand.hbm [shape: f32[2,1024], index: 0, kind: input, shape index: {}]   ;;  %s158_s1 = inlined_call_operand.hbm [shape: f32[2,1024], index: 1, kind: output, shape index: {0}]   ;;  %s159_s2 = inlined_call_operand.hbm [shape: f32[2,1024], index: 2, kind: output, shape index: {1}]  }
   0x1   :  { %9 = vsyncpa [#allocation4], 0 }
   0x2   :  { %10 = vsyncpa [#allocation7], 0  ;;  %s130_s9 = smov [#allocation2]  }
   0x3   :  { %s17_s10 = sshll.u32 %s130_s9, 4  ;;  %s18_s10 = int_to_ptr.vmem [resolvable:$true] %s17_s10 }
   0x4   :  { %s72_s11 = scalar_lea.vmem %s18_s10, 256  ;;  %p77_p1 = scmp.lt.s32.totalorder %s18_s10, %s18_s10 }
   0x5   :  { %p73_p0 = scmp.ne.s32.totalorder %s18_s10, %s72_s11  ;;  %p78_p2 = scmp.lt.s32.totalorder %s72_s11, %s72_s11 }
   0x7   :  { %p79_p3 = por %p78_p2, %p77_p1 }
   0x9   :  { %p80_p4 = pnand %p79_p3, %p73_p0 }
   0xb   :  { %83 = shalt.err (!%p80_p4)
}
   0xc   :  { %20 = dma.hbm_to_vmem [thread:$0]  %s157_s0, 256, %s18_s10, [#allocation3]  }
   0xd   :  { %124 = dma.done.wait [#allocation3], 256  }
   0xe   :  { %125 = vsyncadd [#allocation3], 4294967040  ;;  %s131_s14 = smov [#allocation5]   ;;  %s132_s16 = smov [#allocation6]   ;;  %v24_v0 = vld [vmem:[#allocation2] sm:$0xff]  ;;  %v25_v1 = vld [vmem:[#allocation2 + $0x8] sm:$0xff] }
   0xf   :  { %s38_s15 = sshll.u32 %s131_s14, 4  ;;  %s48_s17 = sshll.u32 %s132_s16, 4  ;;  %26 = vst [vmem:[#allocation5] sm:$0xff] %v24_v0  ;;  %27 = vst [vmem:[#allocation5 + $0x8] sm:$0xff] %v25_v1  ;;  %s39_s15 = int_to_ptr.vmem [resolvable:$true] %s38_s15  ;;  %s49_s17 = int_to_ptr.vmem [resolvable:$true] %s48_s17 }
  0x10   :  { %30 = vst [vmem:[#allocation6] sm:$0xff] %v24_v0  ;;  %31 = vst [vmem:[#allocation6 + $0x8] sm:$0xff] %v25_v1  ;;  %s84_s18 = scalar_lea.vmem %s39_s15, 256  ;;  %p89_p6 = scmp.lt.s32.totalorder %s39_s15, %s39_s15 }
  0x11   :  { %p85_p5 = scmp.ne.s32.totalorder %s39_s15, %s84_s18  ;;  %p90_p7 = scmp.lt.s32.totalorder %s84_s18, %s84_s18 }
  0x13   :  { %p91_p8 = por %p90_p7, %p89_p6 }
  0x15   :  { %p92_p9 = pnand %p91_p8, %p85_p5 }
  0x17   :  { %95 = shalt.err (!%p92_p9)
}
  0x18   :  { %41 = dma.vmem_to_hbm [thread:$0]  %s39_s15, 256, %s158_s1, [#allocation4]  }
  0x19   :  { %s104_s20 = scalar_lea.vmem %s49_s17, 256  ;;  %p109_p11 = scmp.lt.s32.totalorder %s49_s17, %s49_s17 }
  0x1a   :  { %p105_p10 = scmp.ne.s32.totalorder %s49_s17, %s104_s20  ;;  %p110_p12 = scmp.lt.s32.totalorder %s104_s20, %s104_s20 }
  0x1c   :  { %p111_p13 = por %p110_p12, %p109_p11 }
  0x1e   :  { %p112_p0 = pnand %p111_p13, %p105_p10 }
  0x20   :  { %115 = shalt.err (!%p112_p0)
}
  0x21   :  { %51 = dma.vmem_to_hbm [thread:$0]  %s49_s17, 256, %s159_s2, [#allocation7]  }
  0x22   :  { %126 = dma.done.wait [#allocation4], 256  }
  0x23   :  { %127 = vsyncadd [#allocation4], 4294967040 }
  0x24   :  { %128 = dma.done.wait [#allocation7], 256  }
  0x25   :  { %129 = vsyncadd [#allocation7], 4294967040 }
  0x26   :  { %58 = vsyncpa [#allocation3], 1 }
  0x27   :  { %59 = vsyncpa [#allocation4], 1 }
  0x28   :  { %60 = vsyncpa [#allocation7], 1 }

</bundles_post_ra>
